<compile_context>
chip_gen: v6e
topology: v6e:2x2x1
jax: 0.10.0
libtpu: 0.0.40
codegen_flags: <defaults>
</compile_context>

<pallas_src>
import functools

import jax
import jax.numpy as jnp
from jax.experimental import pallas as pl
from jax.experimental.pallas import tpu as pltpu

_F32_MIN = float(jnp.finfo(jnp.float32).min)


def _pick_tile(dim, target, align):
    """Largest tile <= target that divides `dim` and is a multiple of `align`;
    falls back to the full dim (a block equal to the array dim is always a
    legal Mosaic tiling)."""
    if dim <= target:
        return dim
    t = (target // align) * align
    while t >= align:
        if dim % t == 0:
            return t
        t -= align
    return dim


# ----------------------------------------------------------------------------
# Kernel 1: tiled multi-output linear   y_i = x @ W_i^T + b_i
#   grid = (M/tm, Eout/tn, Ein/tk); one f32 VMEM accumulator per output,
#   zeroed at k==0, bias-add + downcast store at k==last.  The x tile is read
#   once and reused by all n_out weight tiles (fused QKV).
# ----------------------------------------------------------------------------
def _make_linear_kernel(n_out):
    def kernel(*refs):
        x_ref = refs[0]
        w_refs = refs[1:1 + n_out]
        b_refs = refs[1 + n_out:1 + 2 * n_out]
        o_refs = refs[1 + 2 * n_out:1 + 3 * n_out]
        acc_refs = refs[1 + 3 * n_out:]
        kk = pl.program_id(2)

        @pl.when(kk == 0)
        def _init():
            for acc in acc_refs:
                acc[...] = jnp.zeros_like(acc)

        x = x_ref[...]
        for w_ref, acc in zip(w_refs, acc_refs):
            # x:(tm,tk) @ W:(tn,tk)^T  -- transpose folded into dim numbers.
            acc[...] += jax.lax.dot_general(
                x, w_ref[...],
                dimension_numbers=(((1,), (1,)), ((), ())),
                preferred_element_type=jnp.float32,
            )

        @pl.when(kk == pl.num_programs(2) - 1)
        def _finalize():
            for o_ref, b_ref, acc in zip(o_refs, b_refs, acc_refs):
                o_ref[...] = (acc[...] + b_ref[...]).astype(o_ref.dtype)

    return kernel


def fused_linear_pallas(x, weights, biases, *, tm=256, tn=256, tk=512):
    """x:(M,Ein); weights[i]:(Eout,Ein) torch layout; biases[i]:(Eout,).
    Returns a tuple of n arrays, each (M, Eout), in x.dtype."""
    n = len(weights)
    M, Ein = x.shape
    Eout = weights[0].shape[0]
    tm = _pick_tile(M, tm, 8)
    tn = _pick_tile(Eout, tn, 128)
    tk = _pick_tile(Ein, tk, 128)
    grid = (M // tm, Eout // tn, Ein // tk)
    b2d = tuple(b.reshape(1, Eout) for b in biases)

    x_spec = pl.BlockSpec((tm, tk), lambda i, j, kk: (i, kk))
    w_spec = pl.BlockSpec((tn, tk), lambda i, j, kk: (j, kk))
    b_spec = pl.BlockSpec((1, tn), lambda i, j, kk: (0, j))
    o_spec = pl.BlockSpec((tm, tn), lambda i, j, kk: (i, j))

    itemsize = x.dtype.itemsize
    cost = pl.CostEstimate(
        flops=2 * n * M * Eout * Ein,
        transcendentals=0,
        bytes_accessed=(M * Ein + n * (Eout * Ein + M * Eout + Eout)) * itemsize,
    )

    return pl.pallas_call(
        _make_linear_kernel(n),
        out_shape=tuple(jax.ShapeDtypeStruct((M, Eout), x.dtype) for _ in range(n)),
        grid=grid,
        in_specs=[x_spec] + [w_spec] * n + [b_spec] * n,
        out_specs=tuple(o_spec for _ in range(n)),
        scratch_shapes=[pltpu.VMEM((tm, tn), jnp.float32) for _ in range(n)],
        compiler_params=pltpu.CompilerParams(
            dimension_semantics=("parallel", "parallel", "arbitrary"),
            vmem_limit_bytes=32 * 1024 * 1024,
        ),
        cost_estimate=cost,
    )(x, *weights, *b2d)


# ----------------------------------------------------------------------------
# Kernel 2: flash-style attention over (B, T, H, D) views.
#   grid = (B, T/tq, S/tk); the KV axis is last ("arbitrary") and carries the
#   online-softmax state (m, l, acc) in VMEM scratch.  All heads of a q-tile
#   are processed in one program so blocks stay (H, D)-full in the minor dims
#   and no HBM transpose is ever needed.
# ----------------------------------------------------------------------------
def _attn_kernel(q_ref, k_ref, v_ref, mask_ref, o_ref, m_sc, l_sc, acc_sc,
                 *, scaling, num_heads):
    ki = pl.program_id(2)

    @pl.when(ki == 0)
    def _init():
        m_sc[...] = jnp.full_like(m_sc, -jnp.inf)
        l_sc[...] = jnp.zeros_like(l_sc)
        acc_sc[...] = jnp.zeros_like(acc_sc)

    mask = mask_ref[0, 0].astype(jnp.float32)          # (tq, tk)
    q_all = q_ref[0]                                   # (tq, H, D)
    k_all = k_ref[0]                                   # (tk, H, D)
    v_all = v_ref[0]                                   # (tk, H, D)

    for h in range(num_heads):                         # static unroll over heads
        q = q_all[:, h, :]                             # (tq, D)
        k = k_all[:, h, :]                             # (tk, D)
        v = v_all[:, h, :]                             # (tk, D)

        s = jax.lax.dot_general(                       # q @ k^T  -> (tq, tk)
            q, k, dimension_numbers=(((1,), (1,)), ((), ())),
            preferred_element_type=jnp.float32)
        s = s * scaling + mask
        s = jnp.maximum(s, _F32_MIN)                   # torch.max(., finfo.min)

        m_prev = m_sc[h]                               # (tq, 1)
        m_new = jnp.maximum(m_prev, jnp.max(s, axis=-1, keepdims=True))
        alpha = jnp.exp(m_prev - m_new)
        p = jnp.exp(s - m_new)                         # (tq, tk), f32
        l_sc[h] = alpha * l_sc[h] + jnp.sum(p, axis=-1, keepdims=True)
        acc_sc[h] = alpha * acc_sc[h] + jax.lax.dot_general(
            p.astype(v.dtype), v,                      # P @ V -> (tq, D)
            dimension_numbers=(((1,), (0,)), ((), ())),
            preferred_element_type=jnp.float32)
        m_sc[h] = m_new

    @pl.when(ki == pl.num_programs(2) - 1)
    def _finalize():
        for h in range(num_heads):
            inv_l = pl.reciprocal(l_sc[h], approx=True)            # EUP slot
            o_ref[0, :, h, :] = (acc_sc[h] * inv_l).astype(o_ref.dtype)


def attention_pallas(q, k, v, mask, scaling, *, tq_target=128, tk_target=256):
    """q,k,v:(B,T/S,H,D) views of the projection outputs; mask:(B,1,T,S)
    additive; returns (B,T,H,D) in q.dtype."""
    B, T, H, D = q.shape
    S = k.shape[1]
    tq = _pick_tile(T, tq_target, 8)      # 2nd-minor of the mask block
    tk = _pick_tile(S, tk_target, 128)    # minor dim of the mask block
    nq, nk = T // tq, S // tk

    kern = functools.partial(_attn_kernel, scaling=scaling, num_heads=H)
    cost = pl.CostEstimate(
        flops=4 * B * H * T * S * D,
        transcendentals=B * H * T * S,
        bytes_accessed=(4 * B * T * H * D + B * T * S) * q.dtype.itemsize,
    )

    return pl.pallas_call(
        kern,
        out_shape=jax.ShapeDtypeStruct((B, T, H, D), q.dtype),
        grid=(B, nq, nk),
        in_specs=[
            pl.BlockSpec((1, tq, H, D), lambda b, qi, ki: (b, qi, 0, 0)),
            pl.BlockSpec((1, tk, H, D), lambda b, qi, ki: (b, ki, 0, 0)),
            pl.BlockSpec((1, tk, H, D), lambda b, qi, ki: (b, ki, 0, 0)),
            pl.BlockSpec((1, 1, tq, tk), lambda b, qi, ki: (b, 0, qi, ki)),
        ],
        out_specs=pl.BlockSpec((1, tq, H, D), lambda b, qi, ki: (b, qi, 0, 0)),
        scratch_shapes=[
            pltpu.VMEM((H, tq, 1), jnp.float32),   # running max m
            pltpu.VMEM((H, tq, 1), jnp.float32),   # running denom l
            pltpu.VMEM((H, tq, D), jnp.float32),   # running numerator acc
        ],
        compiler_params=pltpu.CompilerParams(
            dimension_semantics=("parallel", "parallel", "arbitrary"),
            vmem_limit_bytes=32 * 1024 * 1024,
        ),
        cost_estimate=cost,
    )(q, k, v, mask)


# ----------------------------------------------------------------------------
# Full QuantOPTAttention forward (self-attention path, no past_key_value,
# quantization disabled -> QuantLinear / QuantMatMul act as plain linear/bmm).
# Returns (attn_output, attn_probs_reshaped=None, past_key_value=None),
# matching the PyTorch module with output_attentions=False, is_decoder=False.
# ----------------------------------------------------------------------------
def quant_opt_attention_forward(hidden_states, attention_mask, params, num_heads):
    # TODO(synk): cross-attention (key_value_states), past_key_value cache,
    #             layer_head_mask and output_attentions branches not implemented.
    # TODO(synk): weight/activation fake-quant (use_*_quant=True) not implemented;
    #             this is the quantization-disabled path.
    B, T, E = hidden_states.shape
    D = E // num_heads
    scaling = float(D) ** (-0.5)

    x2d = hidden_states.reshape(B * T, E)
    q2d, k2d, v2d = fused_linear_pallas(
        x2d,
        (params["wq"], params["wk"], params["wv"]),
        (params["bq"], params["bk"], params["bv"]),
    )

    # Free view reshapes only -- no HBM transposes: (B*T,E) -> (B,T,H,D)
    q4 = q2d.reshape(B, T, num_heads, D)
    k4 = k2d.reshape(B, T, num_heads, D)
    v4 = v2d.reshape(B, T, num_heads, D)

    attn4 = attention_pallas(q4, k4, v4, attention_mask, scaling)   # (B,T,H,D)
    attn2d = attn4.reshape(B * T, E)                                # free view

    (out2d,) = fused_linear_pallas(attn2d, (params["wo"],), (params["bo"],))
    return out2d.reshape(B, T, E), None, None


# ----------------------------------------------------------------------------
# Pure-JAX reference for verification.
# ----------------------------------------------------------------------------
def reference_forward(hidden_states, attention_mask, params, num_heads):
    B, T, E = hidden_states.shape
    D = E // num_heads
    scaling = float(D) ** (-0.5)

    def lin(x, w, b):
        return x @ w.T + b

    q = lin(hidden_states, params["wq"], params["bq"]) * scaling
    k = lin(hidden_states, params["wk"], params["bk"])
    v = lin(hidden_states, params["wv"], params["bv"])

    def sh(t):
        return t.reshape(B, T, num_heads, D).transpose(0, 2, 1, 3)

    q, k, v = sh(q), sh(k), sh(v)
    s = jnp.einsum("bhtd,bhsd->bhts", q, k) + attention_mask
    s = jnp.maximum(s, jnp.finfo(jnp.float32).min)
    p = jax.nn.softmax(s, axis=-1)
    o = jnp.einsum("bhts,bhsd->bhtd", p, v)
    o = o.transpose(0, 2, 1, 3).reshape(B, T, E)
    return lin(o, params["wo"], params["bo"])


if __name__ == "__main__":
    B, T, E, H = 2, 8, 32, 4
    key = jax.random.PRNGKey(0)
    keys = jax.random.split(key, 10)

    params = {
        "wq": jax.random.normal(keys[0], (E, E), jnp.float32) * 0.05,
        "bq": jax.random.normal(keys[1], (E,), jnp.float32) * 0.01,
        "wk": jax.random.normal(keys[2], (E, E), jnp.float32) * 0.05,
        "bk": jax.random.normal(keys[3], (E,), jnp.float32) * 0.01,
        "wv": jax.random.normal(keys[4], (E, E), jnp.float32) * 0.05,
        "bv": jax.random.normal(keys[5], (E,), jnp.float32) * 0.01,
        "wo": jax.random.normal(keys[6], (E, E), jnp.float32) * 0.05,
        "bo": jax.random.normal(keys[7], (E,), jnp.float32) * 0.01,
    }
    hidden_states = jax.random.normal(keys[8], (B, T, E), jnp.float32)

    # Causal attention mask in HF/OPT convention: (B, 1, T, S) additive mask,
    # 0 where attended, finfo.min where masked.
    neg = jnp.finfo(jnp.float32).min
    causal = jnp.tril(jnp.ones((T, T), jnp.bool_))
    attention_mask = jnp.where(causal, 0.0, neg)[None, None, :, :]
    attention_mask = jnp.broadcast_to(attention_mask, (B, 1, T, T)).astype(jnp.float32)

    # f32 path (tight check)
    out, attn_probs, past_kv = quant_opt_attention_forward(
        hidden_states, attention_mask, params, num_heads=H
    )
    out = jax.block_until_ready(out)

    ref = reference_forward(hidden_states, attention_mask, params, num_heads=H)
    assert out.shape == (B, T, E)
    assert jnp.allclose(out, ref, atol=5e-3, rtol=5e-3), "f32 mismatch vs reference"

    # bf16 operands (MXU-native) with f32 accumulation -- loose check.
    params_bf16 = {k: v.astype(jnp.bfloat16) for k, v in params.items()}
    hs_bf16 = hidden_states.astype(jnp.bfloat16)
    out_bf16, _, _ = quant_opt_attention_forward(
        hs_bf16, attention_mask, params_bf16, num_heads=H
    )
    out_bf16 = jax.block_until_ready(out_bf16)
    assert out_bf16.dtype == jnp.bfloat16
    assert jnp.allclose(out_bf16.astype(jnp.float32), ref, atol=5e-2, rtol=5e-2), \
        "bf16 mismatch vs reference"

    print("KERNEL_OK")
</pallas_src>

<mosaic_0001>
module attributes {stable_mosaic.version = 11 : i64} {
  func.func @kernel(%arg0: i32, %arg1: i32, %arg2: i32, %arg3: memref<16x32xf32, #tpu.memory_space<vmem>>, %arg4: memref<32x32xf32, #tpu.memory_space<vmem>>, %arg5: memref<32x32xf32, #tpu.memory_space<vmem>>, %arg6: memref<32x32xf32, #tpu.memory_space<vmem>>, %arg7: memref<1x32xf32, #tpu.memory_space<vmem>>, %arg8: memref<1x32xf32, #tpu.memory_space<vmem>>, %arg9: memref<1x32xf32, #tpu.memory_space<vmem>>, %arg10: memref<16x32xf32, #tpu.memory_space<vmem>>, %arg11: memref<16x32xf32, #tpu.memory_space<vmem>>, %arg12: memref<16x32xf32, #tpu.memory_space<vmem>>, %arg13: memref<16x32xf32, #tpu.memory_space<vmem>>, %arg14: memref<16x32xf32, #tpu.memory_space<vmem>>, %arg15: memref<16x32xf32, #tpu.memory_space<vmem>>) attributes {dimension_semantics = [#tpu.dimension_semantics<parallel>, #tpu.dimension_semantics<parallel>, #tpu.dimension_semantics<arbitrary>], iteration_bounds = array<i64: 1, 1, 1>, scalar_prefetch = 0 : i64, scratch_operands = 3 : i64, tpu.core_type = #tpu.core_type<tc>, window_params = [{transform_indices = @transform_0, window_bounds = array<i64: 16, 32>}, {transform_indices = @transform_1, window_bounds = array<i64: 32, 32>}, {transform_indices = @transform_2, window_bounds = array<i64: 32, 32>}, {transform_indices = @transform_3, window_bounds = array<i64: 32, 32>}, {transform_indices = @transform_4, window_bounds = array<i64: 1, 32>}, {transform_indices = @transform_5, window_bounds = array<i64: 1, 32>}, {transform_indices = @transform_6, window_bounds = array<i64: 1, 32>}, {transform_indices = @transform_7, window_bounds = array<i64: 16, 32>}, {transform_indices = @transform_8, window_bounds = array<i64: 16, 32>}, {transform_indices = @transform_9, window_bounds = array<i64: 16, 32>}]} {
    %c0_i32 = arith.constant 0 : i32
    %0 = arith.cmpi eq, %arg2, %c0_i32 : i32
    %1 = arith.extui %0 : i1 to i32
    %c0_i32_0 = arith.constant 0 : i32
    %2 = arith.cmpi ne, %1, %c0_i32_0 : i32
    scf.if %2 {
      %cst_24 = arith.constant 0.000000e+00 : f32
      %22 = vector.broadcast %cst_24 : f32 to vector<16x32xf32>
      %c0_25 = arith.constant 0 : index
      %c0_26 = arith.constant 0 : index
      %23 = vector.load %arg13[%c0_25, %c0_26] : memref<16x32xf32, #tpu.memory_space<vmem>>, vector<16x32xf32>
      tpu.vector_store %arg13[%c0_25, %c0_26], %22 {strides = array<i32>} : memref<16x32xf32, #tpu.memory_space<vmem>>, vector<16x32xf32>,
      %cst_27 = arith.constant 0.000000e+00 : f32
      %24 = vector.broadcast %cst_27 : f32 to vector<16x32xf32>
      %c0_28 = arith.constant 0 : index
      %c0_29 = arith.constant 0 : index
      %25 = vector.load %arg14[%c0_28, %c0_29] : memref<16x32xf32, #tpu.memory_space<vmem>>, vector<16x32xf32>
      tpu.vector_store %arg14[%c0_28, %c0_29], %24 {strides = array<i32>} : memref<16x32xf32, #tpu.memory_space<vmem>>, vector<16x32xf32>,
      %cst_30 = arith.constant 0.000000e+00 : f32
      %26 = vector.broadcast %cst_30 : f32 to vector<16x32xf32>
      %c0_31 = arith.constant 0 : index
      %c0_32 = arith.constant 0 : index
      %27 = vector.load %arg15[%c0_31, %c0_32] : memref<16x32xf32, #tpu.memory_space<vmem>>, vector<16x32xf32>
      tpu.vector_store %arg15[%c0_31, %c0_32], %26 {strides = array<i32>} : memref<16x32xf32, #tpu.memory_space<vmem>>, vector<16x32xf32>,
    } else {
    }
    %c0 = arith.constant 0 : index
    %c0_1 = arith.constant 0 : index
    %3 = vector.load %arg3[%c0, %c0_1] : memref<16x32xf32, #tpu.memory_space<vmem>>, vector<16x32xf32>
    %c0_2 = arith.constant 0 : index
    %c0_3 = arith.constant 0 : index
    %4 = vector.load %arg13[%c0_2, %c0_3] : memref<16x32xf32, #tpu.memory_space<vmem>>, vector<16x32xf32>
    %c0_4 = arith.constant 0 : index
    %c0_5 = arith.constant 0 : index
    %5 = vector.load %arg4[%c0_4, %c0_5] : memref<32x32xf32, #tpu.memory_space<vmem>>, vector<32x32xf32>
    %cst = arith.constant dense<0.000000e+00> : vector<16x32xf32>
    %6 = tpu.matmul %3, %5, %cst {dimension_numbers = #tpu.dot_dimension_numbers<[1], [1], [0], [0], [0, 0, 1, 0], [], []>} : vector<16x32xf32>, vector<32x32xf32>, vector<16x32xf32> -> vector<16x32xf32>
    %7 = arith.addf %4, %6 : vector<16x32xf32>
    %c0_6 = arith.constant 0 : index
    %c0_7 = arith.constant 0 : index
    %8 = vector.load %arg13[%c0_6, %c0_7] : memref<16x32xf32, #tpu.memory_space<vmem>>, vector<16x32xf32>
    tpu.vector_store %arg13[%c0_6, %c0_7], %7 {strides = array<i32>} : memref<16x32xf32, #tpu.memory_space<vmem>>, vector<16x32xf32>,
    %c0_8 = arith.constant 0 : index
    %c0_9 = arith.constant 0 : index
    %9 = vector.load %arg14[%c0_8, %c0_9] : memref<16x32xf32, #tpu.memory_space<vmem>>, vector<16x32xf32>
    %c0_10 = arith.constant 0 : index
    %c0_11 = arith.constant 0 : index
    %10 = vector.load %arg5[%c0_10, %c0_11] : memref<32x32xf32, #tpu.memory_space<vmem>>, vector<32x32xf32>
    %cst_12 = arith.constant dense<0.000000e+00> : vector<16x32xf32>
    %11 = tpu.matmul %3, %10, %cst_12 {dimension_numbers = #tpu.dot_dimension_numbers<[1], [1], [0], [0], [0, 0, 1, 0], [], []>} : vector<16x32xf32>, vector<32x32xf32>, vector<16x32xf32> -> vector<16x32xf32>
    %12 = arith.addf %9, %11 : vector<16x32xf32>
    %c0_13 = arith.constant 0 : index
    %c0_14 = arith.constant 0 : index
    %13 = vector.load %arg14[%c0_13, %c0_14] : memref<16x32xf32, #tpu.memory_space<vmem>>, vector<16x32xf32>
    tpu.vector_store %arg14[%c0_13, %c0_14], %12 {strides = array<i32>} : memref<16x32xf32, #tpu.memory_space<vmem>>, vector<16x32xf32>,
    %c0_15 = arith.constant 0 : index
    %c0_16 = arith.constant 0 : index
    %14 = vector.load %arg15[%c0_15, %c0_16] : memref<16x32xf32, #tpu.memory_space<vmem>>, vector<16x32xf32>
    %c0_17 = arith.constant 0 : index
    %c0_18 = arith.constant 0 : index
    %15 = vector.load %arg6[%c0_17, %c0_18] : memref<32x32xf32, #tpu.memory_space<vmem>>, vector<32x32xf32>
    %cst_19 = arith.constant dense<0.000000e+00> : vector<16x32xf32>
    %16 = tpu.matmul %3, %15, %cst_19 {dimension_numbers = #tpu.dot_dimension_numbers<[1], [1], [0], [0], [0, 0, 1, 0], [], []>} : vector<16x32xf32>, vector<32x32xf32>, vector<16x32xf32> -> vector<16x32xf32>
    %17 = arith.addf %14, %16 : vector<16x32xf32>
    %c0_20 = arith.constant 0 : index
    %c0_21 = arith.constant 0 : index
    %18 = vector.load %arg15[%c0_20, %c0_21] : memref<16x32xf32, #tpu.memory_space<vmem>>, vector<16x32xf32>
    tpu.vector_store %arg15[%c0_20, %c0_21], %17 {strides = array<i32>} : memref<16x32xf32, #tpu.memory_space<vmem>>, vector<16x32xf32>,
    %c0_i32_22 = arith.constant 0 : i32
    %19 = arith.cmpi eq, %arg2, %c0_i32_22 : i32
    %20 = arith.extui %19 : i1 to i32
    %c0_i32_23 = arith.constant 0 : i32
    %21 = arith.cmpi ne, %20, %c0_i32_23 : i32
    scf.if %21 {
      %c0_24 = arith.constant 0 : index
      %c0_25 = arith.constant 0 : index
      %22 = vector.load %arg13[%c0_24, %c0_25] : memref<16x32xf32, #tpu.memory_space<vmem>>, vector<16x32xf32>
      %c0_26 = arith.constant 0 : index
      %c0_27 = arith.constant 0 : index
      %23 = vector.load %arg7[%c0_26, %c0_27] : memref<1x32xf32, #tpu.memory_space<vmem>>, vector<1x32xf32>
      %24 = vector.broadcast %23 : vector<1x32xf32> to vector<16x32xf32>
      %25 = arith.addf %22, %24 : vector<16x32xf32>
      %c0_28 = arith.constant 0 : index
      %c0_29 = arith.constant 0 : index
      %26 = vector.load %arg10[%c0_28, %c0_29] : memref<16x32xf32, #tpu.memory_space<vmem>>, vector<16x32xf32>
      tpu.vector_store %arg10[%c0_28, %c0_29], %25 {strides = array<i32>} : memref<16x32xf32, #tpu.memory_space<vmem>>, vector<16x32xf32>,
      %c0_30 = arith.constant 0 : index
      %c0_31 = arith.constant 0 : index
      %27 = vector.load %arg14[%c0_30, %c0_31] : memref<16x32xf32, #tpu.memory_space<vmem>>, vector<16x32xf32>
      %c0_32 = arith.constant 0 : index
      %c0_33 = arith.constant 0 : index
      %28 = vector.load %arg8[%c0_32, %c0_33] : memref<1x32xf32, #tpu.memory_space<vmem>>, vector<1x32xf32>
      %29 = vector.broadcast %28 : vector<1x32xf32> to vector<16x32xf32>
      %30 = arith.addf %27, %29 : vector<16x32xf32>
      %c0_34 = arith.constant 0 : index
      %c0_35 = arith.constant 0 : index
      %31 = vector.load %arg11[%c0_34, %c0_35] : memref<16x32xf32, #tpu.memory_space<vmem>>, vector<16x32xf32>
      tpu.vector_store %arg11[%c0_34, %c0_35], %30 {strides = array<i32>} : memref<16x32xf32, #tpu.memory_space<vmem>>, vector<16x32xf32>,
      %c0_36 = arith.constant 0 : index
      %c0_37 = arith.constant 0 : index
      %32 = vector.load %arg15[%c0_36, %c0_37] : memref<16x32xf32, #tpu.memory_space<vmem>>, vector<16x32xf32>
      %c0_38 = arith.constant 0 : index
      %c0_39 = arith.constant 0 : index
      %33 = vector.load %arg9[%c0_38, %c0_39] : memref<1x32xf32, #tpu.memory_space<vmem>>, vector<1x32xf32>
      %34 = vector.broadcast %33 : vector<1x32xf32> to vector<16x32xf32>
      %35 = arith.addf %32, %34 : vector<16x32xf32>
      %c0_40 = arith.constant 0 : index
      %c0_41 = arith.constant 0 : index
      %36 = vector.load %arg12[%c0_40, %c0_41] : memref<16x32xf32, #tpu.memory_space<vmem>>, vector<16x32xf32>
      tpu.vector_store %arg12[%c0_40, %c0_41], %35 {strides = array<i32>} : memref<16x32xf32, #tpu.memory_space<vmem>>, vector<16x32xf32>,
    } else {
    }
    return
  }
  func.func @transform_0(%arg0: i32, %arg1: i32, %arg2: i32) -> (i32, i32) {
    %c0_i32 = arith.constant 0 : i32
    return %arg0, %arg2 : i32, i32
  }
  func.func @transform_1(%arg0: i32, %arg1: i32, %arg2: i32) -> (i32, i32) {
    %c0_i32 = arith.constant 0 : i32
    return %arg1, %arg2 : i32, i32
  }
  func.func @transform_2(%arg0: i32, %arg1: i32, %arg2: i32) -> (i32, i32) {
    %c0_i32 = arith.constant 0 : i32
    return %arg1, %arg2 : i32, i32
  }
  func.func @transform_3(%arg0: i32, %arg1: i32, %arg2: i32) -> (i32, i32) {
    %c0_i32 = arith.constant 0 : i32
    return %arg1, %arg2 : i32, i32
  }
  func.func @transform_4(%arg0: i32, %arg1: i32, %arg2: i32) -> (i32, i32) {
    %c0_i32 = arith.constant 0 : i32
    %c0_i32_0 = arith.constant 0 : i32
    return %c0_i32, %arg1 : i32, i32
  }
  func.func @transform_5(%arg0: i32, %arg1: i32, %arg2: i32) -> (i32, i32) {
    %c0_i32 = arith.constant 0 : i32
    %c0_i32_0 = arith.constant 0 : i32
    return %c0_i32, %arg1 : i32, i32
  }
  func.func @transform_6(%arg0: i32, %arg1: i32, %arg2: i32) -> (i32, i32) {
    %c0_i32 = arith.constant 0 : i32
    %c0_i32_0 = arith.constant 0 : i32
    return %c0_i32, %arg1 : i32, i32
  }
  func.func @transform_7(%arg0: i32, %arg1: i32, %arg2: i32) -> (i32, i32) {
    %c0_i32 = arith.constant 0 : i32
    return %arg0, %arg1 : i32, i32
  }
  func.func @transform_8(%arg0: i32, %arg1: i32, %arg2: i32) -> (i32, i32) {
    %c0_i32 = arith.constant 0 : i32
    return %arg0, %arg1 : i32, i32
  }
  func.func @transform_9(%arg0: i32, %arg1: i32, %arg2: i32) -> (i32, i32) {
    %c0_i32 = arith.constant 0 : i32
    return %arg0, %arg1 : i32, i32
  }
}

</mosaic_0001>

<bundles_post_ra>
// kernel: tpu_custom_call.1
= control target key start
LH: loop header
LB: loop body
LE: loop exit
PB: predicated region body
PF: predicated region fallthrough
CT: control target
= control target key end

     0   :  { %15 = vsyncpa [#allocation6], 0  ;;  %s880_s0 = inlined_call_operand.hbm [shape: f32[16,32], index: 0, kind: input, shape index: {}]   ;;  %s881_s1 = inlined_call_operand.hbm [shape: f32[32,32], index: 1, kind: input, shape index: {}]   ;;  %s882_s2 = inlined_call_operand.hbm [shape: f32[32,32], index: 2, kind: input, shape index: {}]   ;;  %s883_s3 = inlined_call_operand.hbm [shape: f32[32,32], index: 3, kind: input, shape index: {}]   ;;  %s884_s4 = inlined_call_operand.vmem [shape: f32[1,32], index: 4, kind: input, shape index: {}]   ;;  %s885_s5 = inlined_call_operand.vmem [shape: f32[1,32], index: 5, kind: input, shape index: {}]   ;;  %s886_s6 = inlined_call_operand.vmem [shape: f32[1,32], index: 6, kind: input, shape index: {}]   ;;  %s887_s7 = inlined_call_operand.hbm [shape: f32[16,32], index: 7, kind: output, shape index: {0}]   ;;  %s888_s8 = inlined_call_operand.hbm [shape: f32[16,32], index: 8, kind: output, shape index: {1}]   ;;  %s889_s9 = inlined_call_operand.hbm [shape: f32[16,32], index: 9, kind: output, shape index: {2}]  }
   0x1   :  { %16 = vsyncpa [#allocation9], 0 }
   0x2   :  { %17 = vsyncpa [#allocation12], 0 }
   0x3   :  { %18 = vsyncpa [#allocation7], 0 }
   0x4   :  { %19 = vsyncpa [#allocation15], 0  ;;  %s721_s30 = smov [#allocation8]   ;;  %s722_s11 = smov [#allocation5]  }
   0x5   :  { %s37_s10 = sshll.u32 %s721_s30, 4  ;;  %s25_s12 = sshll.u32 %s722_s11, 4  ;;  %s38_s10 = int_to_ptr.vmem [resolvable:$true] %s37_s10  ;;  %s26_s12 = int_to_ptr.vmem [resolvable:$true] %s25_s12 }
   0x6   :  { %s579_s13 = scalar_lea.vmem %s38_s10, 512  ;;  %p584_p1 = scmp.lt.s32.totalorder %s38_s10, %s38_s10 }
   0x7   :  { %p580_p0 = scmp.ne.s32.totalorder %s38_s10, %s579_s13  ;;  %p585_p2 = scmp.lt.s32.totalorder %s579_s13, %s579_s13 }
   0x9   :  { %p586_p3 = por %p585_p2, %p584_p1 }
   0xb   :  { %p587_p4 = pnand %p586_p3, %p580_p0 }
   0xd   :  { %590 = shalt.err (!%p587_p4)
}
   0xe   :  { %s723_s14 = smov 128   ;;  %s724_s15 = smov 8  }
   0xf   :  { %43 = dma.hbm_to_vmem [thread:$0]  %s881_s1, 512, %s38_s10, [#allocation9], %s723_s14, %s723_s14, %s724_s15  }
  0x10   :  { %s599_s18 = scalar_lea.vmem %s26_s12, 256  ;;  %p604_p6 = scmp.lt.s32.totalorder %s26_s12, %s26_s12 }
  0x11   :  { %p600_p5 = scmp.ne.s32.totalorder %s26_s12, %s599_s18  ;;  %p605_p7 = scmp.lt.s32.totalorder %s599_s18, %s599_s18 }
  0x13   :  { %p606_p8 = por %p605_p7, %p604_p6 }
  0x15   :  { %p607_p9 = pnand %p606_p8, %p600_p5 }
  0x17   :  { %610 = shalt.err (!%p607_p9)
}
  0x18   :  { %31 = dma.hbm_to_vmem [thread:$0]  %s880_s0, 256, %s26_s12, [#allocation6], %s723_s14, %s723_s14, %s724_s15  }
  0x19   :  { %s725_s21 = smov [#allocation10]   ;;  %s726_s23 = smov [#allocation11]  }
  0x1a   :  { %s49_s22 = sshll.u32 %s725_s21, 4  ;;  %s61_s24 = sshll.u32 %s726_s23, 4  ;;  %s50_s22 = int_to_ptr.vmem [resolvable:$true] %s49_s22  ;;  %s62_s24 = int_to_ptr.vmem [resolvable:$true] %s61_s24 }
  0x1b   :  { %s619_s1 = scalar_lea.vmem %s50_s22, 512  ;;  %p624_p11 = scmp.lt.s32.totalorder %s50_s22, %s50_s22 }
  0x1c   :  { %p620_p10 = scmp.ne.s32.totalorder %s50_s22, %s619_s1  ;;  %p625_p12 = scmp.lt.s32.totalorder %s619_s1, %s619_s1 }
  0x1e   :  { %p626_p13 = por %p625_p12, %p624_p11 }
  0x20   :  { %p627_p0 = pnand %p626_p13, %p620_p10 }
  0x22   :  { %630 = shalt.err (!%p627_p0)
}
  0x23   :  { %55 = dma.hbm_to_vmem [thread:$0]  %s882_s2, 512, %s50_s22, [#allocation9], %s723_s14, %s723_s14, %s724_s15  }
  0x24   :  { %s639_s0 = scalar_lea.vmem %s62_s24, 512  ;;  %p644_p2 = scmp.lt.s32.totalorder %s62_s24, %s62_s24 }
  0x25   :  { %p640_p1 = scmp.ne.s32.totalorder %s62_s24, %s639_s0  ;;  %p645_p3 = scmp.lt.s32.totalorder %s639_s0, %s639_s0 }
  0x27   :  { %p646_p4 = por %p645_p3, %p644_p2 }
  0x29   :  { %p647_p5 = pnand %p646_p4, %p640_p1 }
  0x2b   :  { %650 = shalt.err (!%p647_p5)
}
  0x2c   :  { %67 = dma.hbm_to_vmem [thread:$0]  %s883_s3, 512, %s62_s24, [#allocation12], %s723_s14, %s723_s14, %s724_s15  }
  0x2d   :  { %711 = dma.done.wait [#allocation6], 256  }
  0x2e   :  { %712 = vsyncadd [#allocation6], 4294967040 }
  0x2f   :  { %713 = dma.done.wait [#allocation9], 1024  }
  0x30   :  { %714 = vsyncadd [#allocation9], 4294966272 }
  0x31   :  { %715 = dma.done.wait [#allocation12], 512  }
  0x32   :  { %716 = vsyncadd [#allocation12], 4294966784  ;;  %vm90_vm0 = vcmask 261120   ;;  %v727_v0 = vmov 0.0   ;;  %v104_v1 = vld [vmem:[#allocation8 + $0x18] sm:$0xff]  ;;  %v103_v2 = vld [vmem:[#allocation8 + $0x10] sm:$0xff] }
  0x33   :  { %92 = vst.msk [vmem:[#allocation2 + $0x8] sm:$0xff] %vm90_vm0, %v727_v0  ;;  %91 = vst.msk [vmem:[#allocation2] sm:$0xff] %vm90_vm0, %v727_v0  ;;  %528 = vmatprep.subr.msk.mxu0 %vm90_vm0, %v104_v1  ;;  %v208_v3 = vld [vmem:[#allocation10 + $0x18] sm:$0xff]  ;;  %v97_v4 = vld [vmem:[#allocation5] sm:$0xff]  ;;  %s728_s10 = smov [#allocation13]   ;;  %s729_s12 = smov [#allocation14]  }
  0x34   :  { %93 = vst.msk [vmem:[#allocation3] sm:$0xff] %vm90_vm0, %v727_v0  ;;  %94 = vst.msk [vmem:[#allocation3 + $0x8] sm:$0xff] %vm90_vm0, %v727_v0  ;;  %529 = vmatpush3.xpose.msk.msra.mxu0 %vm90_vm0, %v104_v1  ;;  %539 = vmatprep.subr.msk.mxu1 %vm90_vm0, %v208_v3  ;;  %v207_v5 = vld [vmem:[#allocation10 + $0x10] sm:$0xff]  ;;  %v102_v6 = vld [vmem:[#allocation8 + $0x8] sm:$0xff]  ;;  %s444_s11 = sshll.u32 %s728_s10, 4  ;;  %s456_s13 = sshll.u32 %s729_s12, 4  ;;  %s445_s11 = int_to_ptr.vmem [resolvable:$true] %s444_s11  ;;  %s457_s13 = int_to_ptr.vmem [resolvable:$true] %s456_s13 }
  0x35   :  { %95 = vst.msk [vmem:[#allocation4] sm:$0xff] %vm90_vm0, %v727_v0  ;;  %96 = vst.msk [vmem:[#allocation4 + $0x8] sm:$0xff] %vm90_vm0, %v727_v0  ;;  %530 = vmatprep.subr.msk.mxu0 %vm90_vm0, %v103_v2  ;;  %540 = vmatpush3.xpose.msk.msra.mxu1 %vm90_vm0, %v208_v3  ;;  %v206_v7 = vld [vmem:[#allocation10 + $0x8] sm:$0xff]  ;;  %v101_v8 = vld [vmem:[#allocation8] sm:$0xff]  ;;  %p656_p7 = scmp.lt.s32.totalorder %s445_s11, %s445_s11 }
  0x36   :  { %536 = vmatprep.mubr.msk.f32.mxu0 %vm90_vm0, %v97_v4  ;;  %541 = vmatprep.subr.msk.mxu1 %vm90_vm0, %v207_v5  ;;  %v205_v9 = vld [vmem:[#allocation10] sm:$0xff]  ;;  %v305_v10 = vld [vmem:[#allocation11 + $0x18] sm:$0xff]  ;;  %v304_v12 = vld [vmem:[#allocation11 + $0x10] sm:$0xff] }
  0x37   :  { %547 = vmatprep.mubr.msk.f32.mxu1 %vm90_vm0, %v97_v4  ;;  %v98_v11 = vld [vmem:[#allocation5 + $0x8] sm:$0xff]  ;;  %v303_v13 = vld [vmem:[#allocation11 + $0x8] sm:$0xff]  ;;  %v302_v14 = vld [vmem:[#allocation11] sm:$0xff] }
  0x38   :  { %531 = vmatpush3.xpose.msk.msra.mxu0 %vm90_vm0, %v103_v2  ;;  %v507_v27 = vld [vmem:[%s884_s4] ss:$0 sm:$0xff]  ;;  %s651_s4 = scalar_lea.vmem %s445_s11, 256 }
  0x39   :  { %532 = vmatprep.subr.msk.mxu0 %vm90_vm0, %v102_v6  ;;  %542 = vmatpush3.xpose.msk.msra.mxu1 %vm90_vm0, %v207_v5  ;;  %v508_v28 = vld [vmem:[%s885_s5] ss:$0 sm:$0xff]  ;;  %p652_p6 = scmp.ne.s32.totalorder %s445_s11, %s651_s4  ;;  %p657_p8 = scmp.lt.s32.totalorder %s651_s4, %s651_s4 }
  0x3a   :  { %543 = vmatprep.subr.msk.mxu1 %vm90_vm0, %v206_v7  ;;  %v100_v15 = vld [vmem:[#allocation2 + $0x8] sm:$0xff]  ;;  %v99_v18 = vld [vmem:[#allocation2] sm:$0xff] }
  0x3b   :  { %v204_v16 = vld [vmem:[#allocation3 + $0x8] sm:$0xff]  ;;  %v203_v21 = vld [vmem:[#allocation3] sm:$0xff]  ;;  %p658_p9 = por %p657_p8, %p656_p7 }
  0x3c   :  { %533 = vmatpush3.xpose.msk.msra.mxu0 %vm90_vm0, %v102_v6  ;;  %v301_v36 = vld [vmem:[#allocation4 + $0x8] sm:$0xff]  ;;  %v300_v39 = vld [vmem:[#allocation4] sm:$0xff] }
  0x3d   :  { %534 = vmatprep.subr.msk.mxu0 %vm90_vm0, %v101_v8  ;;  %544 = vmatpush3.xpose.msk.msra.mxu1 %vm90_vm0, %v206_v7  ;;  %p659_p10 = pnand %p658_p9, %p652_p6 }
  0x3e   :  { %545 = vmatprep.subr.msk.mxu1 %vm90_vm0, %v205_v9 }
  0x40   :  { %535 = vmatpush3.xpose.msk.msra.mxu0 %vm90_vm0, %v101_v8 }
  0x41   :  { %550 = vmatprep.subr.msk.mxu0 %vm90_vm0, %v305_v10  ;;  %546 = vmatpush3.xpose.msk.msra.mxu1 %vm90_vm0, %v205_v9 }
  0x43   :  { %537 = vmatmul.mubr.msk.f32.vlgmr.msra.gmra.mxu0 %vm90_vm0, %v98_v11 }
  0x44   :  { %551 = vmatpush3.xpose.msk.msra.mxu0 %vm90_vm0, %v305_v10  ;;  %548 = vmatmul.mubr.msk.f32.vlgmr.msra.gmra.mxu1 %vm90_vm0, %v98_v11 }
  0x45   :  { %552 = vmatprep.subr.msk.mxu0 %vm90_vm0, %v304_v12  ;;  %558 = vmatprep.mubr.msk.f32.mxu0 %vm90_vm0, %v97_v4 }
  0x48   :  { %553 = vmatpush3.xpose.msk.msra.mxu0 %vm90_vm0, %v304_v12 }
  0x49   :  { %554 = vmatprep.subr.msk.mxu0 %vm90_vm0, %v303_v13 }
  0x4c   :  { %555 = vmatpush3.xpose.msk.msra.mxu0 %vm90_vm0, %v303_v13 }
  0x4d   :  { %556 = vmatprep.subr.msk.mxu0 %vm90_vm0, %v302_v14 }
  0x50   :  { %557 = vmatpush3.xpose.msk.msra.mxu0 %vm90_vm0, %v302_v14 }
  0x53   :  { %559 = vmatmul.mubr.msk.f32.vlgmr.msra.gmra.mxu0 %vm90_vm0, %v98_v11 }
 0x103   :  { %v538_v17 = vpop.f32.mrf.mxu0 }
 0x104   :  { %v200_v19 = vadd.f32 %v538_v17, %v100_v15  ;;  %v549_v20 = vpop.f32.mrf.mxu1 }
 0x105   :  { %v190_v22 = vpop.f32.mrf.mxu0  ;;  %v297_v23 = vadd.f32 %v549_v20, %v204_v16 }
 0x106   :  { %202 = vst.msk [vmem:[#allocation2 + $0x8] sm:$0xff] %vm90_vm0, %v200_v19  ;;  %v199_v24 = vadd.f32 %v190_v22, %v99_v18  ;;  %v287_v25 = vpop.f32.mrf.mxu1 }
 0x107   :  { %299 = vst.msk [vmem:[#allocation3 + $0x8] sm:$0xff] %vm90_vm0, %v297_v23  ;;  %v296_v26 = vadd.f32 %v287_v25, %v203_v21 }
 0x108   :  { %201 = vst.msk [vmem:[#allocation2] sm:$0xff] %vm90_vm0, %v199_v24 }
 0x109   :  { %298 = vst.msk [vmem:[#allocation3] sm:$0xff] %vm90_vm0, %v296_v26 }
 0x10d   :  { %v401_v29 = vld [vmem:[#allocation2 + $0x8] sm:$0xff] }
 0x10e   :  { %v414_v30 = vld [vmem:[#allocation3 + $0x8] sm:$0xff]  ;;  %v410_v31 = vadd.f32 %v507_v27, %v401_v29 }
 0x10f   :  { %v423_v32 = vadd.f32 %v508_v28, %v414_v30  ;;  %v400_v33 = vld [vmem:[#allocation2] sm:$0xff] }
 0x110   :  { %v413_v34 = vld [vmem:[#allocation3] sm:$0xff]  ;;  %v409_v35 = vadd.f32 %v507_v27, %v400_v33  ;;  %412 = vst.msk [vmem:[#allocation13 + $0x8] sm:$0xff] %vm90_vm0, %v410_v31 }
 0x111   :  { %v422_v37 = vadd.f32 %v508_v28, %v413_v34  ;;  %425 = vst.msk [vmem:[#allocation14 + $0x8] sm:$0xff] %vm90_vm0, %v423_v32 }
 0x112   :  { %411 = vst.msk [vmem:[#allocation13] sm:$0xff] %vm90_vm0, %v409_v35 }
 0x113   :  { %v560_v38 = vpop.f32.mrf.mxu0  ;;  %424 = vst.msk [vmem:[#allocation14] sm:$0xff] %vm90_vm0, %v422_v37 }
 0x114   :  { %662 = shalt.err (!%p659_p10)
}
 0x115   :  { %450 = dma.vmem_to_hbm [thread:$0]  %s445_s11, 256, %s887_s7, [#allocation7], %s723_s14, %s723_s14, %s724_s15   ;;  %v394_v40 = vadd.f32 %v560_v38, %v301_v36 }
 0x116   :  { %s671_s17 = scalar_lea.vmem %s457_s13, 256  ;;  %p676_p12 = scmp.lt.s32.totalorder %s457_s13, %s457_s13 }
 0x117   :  { %p672_p11 = scmp.ne.s32.totalorder %s457_s13, %s671_s17  ;;  %p677_p13 = scmp.lt.s32.totalorder %s671_s17, %s671_s17 }
 0x119   :  { %p678_p0 = por %p677_p13, %p676_p12 }
 0x11b   :  { %p679_p1 = pnand %p678_p0, %p672_p11 }
 0x11d   :  { %682 = shalt.err (!%p679_p1)
}
 0x11e   :  { %462 = dma.vmem_to_hbm [thread:$0]  %s457_s13, 256, %s888_s8, [#allocation15], %s723_s14, %s723_s14, %s724_s15   ;;  %v384_v41 = vpop.f32.mrf.mxu0  ;;  %396 = vst.msk [vmem:[#allocation4 + $0x8] sm:$0xff] %vm90_vm0, %v394_v40 }
 0x11f   :  { %v393_v42 = vadd.f32 %v384_v41, %v300_v39  ;;  %v509_v43 = vld [vmem:[%s886_s6] ss:$0 sm:$0xff]  ;;  %s730_s21 = smov [#allocation16]  }
 0x120   :  { %s468_s22 = sshll.u32 %s730_s21, 4  ;;  %s469_s22 = int_to_ptr.vmem [resolvable:$true] %s468_s22 }
 0x121   :  { %395 = vst.msk [vmem:[#allocation4] sm:$0xff] %vm90_vm0, %v393_v42  ;;  %s691_s8 = scalar_lea.vmem %s469_s22, 256  ;;  %p696_p3 = scmp.lt.s32.totalorder %s469_s22, %s469_s22 }
 0x122   :  { %p692_p2 = scmp.ne.s32.totalorder %s469_s22, %s691_s8  ;;  %p697_p4 = scmp.lt.s32.totalorder %s691_s8, %s691_s8 }
 0x124   :  { %p698_p5 = por %p697_p4, %p696_p3 }
 0x125   :  { %v427_v44 = vld [vmem:[#allocation4 + $0x8] sm:$0xff] }
 0x126   :  { %v436_v45 = vadd.f32 %v509_v43, %v427_v44  ;;  %p699_p6 = pnand %p698_p5, %p692_p2 }
 0x128   :  { %v426_v46 = vld [vmem:[#allocation4] sm:$0xff]  ;;  %438 = vst.msk [vmem:[#allocation16 + $0x8] sm:$0xff] %vm90_vm0, %v436_v45 }
 0x129   :  { %v435_v47 = vadd.f32 %v509_v43, %v426_v46 }
 0x12b   :  { %437 = vst.msk [vmem:[#allocation16] sm:$0xff] %vm90_vm0, %v435_v47 }
 0x12c   :  { %702 = shalt.err (!%p699_p6)
}
 0x12d   :  { %474 = dma.vmem_to_hbm [thread:$0]  %s469_s22, 256, %s889_s9, [#allocation15], %s723_s14, %s723_s14, %s724_s15  }
 0x12e   :  { %717 = dma.done.wait [#allocation7], 256  }
 0x12f   :  { %718 = vsyncadd [#allocation7], 4294967040 }
 0x130   :  { %719 = dma.done.wait [#allocation15], 512  }
 0x131   :  { %720 = vsyncadd [#allocation15], 4294966784 }
 0x132   :  { %484 = vsyncpa [#allocation6], 1 }
 0x133   :  { %485 = vsyncpa [#allocation9], 1 }
 0x134   :  { %486 = vsyncpa [#allocation12], 1 }
 0x135   :  { %487 = vsyncpa [#allocation7], 1 }
 0x136   :  { %488 = vsyncpa [#allocation15], 1 }

</bundles_post_ra>
